<compile_context>
chip_gen: v7x
topology: tpu7x:2x2x1
jax: 0.10.0
libtpu: 0.0.40
codegen_flags: <defaults>
</compile_context>

<pallas_src>
import functools

import jax
import jax.numpy as jnp
from jax.experimental import pallas as pl
from jax.experimental.pallas import tpu as pltpu

_LANE = 128
_SMALL_FAST_PATH_BYTES = 1 << 20   # below this, plain XLA fuses better
_TWO_TILE_MIN_BYTES = 4 << 20      # split into >=2 tiles (feeds both v7x TCs)


# --------------------------------------------------------------------------
# helpers
# --------------------------------------------------------------------------
def _sublane(dtype) -> int:
    """Sublane multiple for a dtype: 8 (f32), 16 (bf16/f16), 32 (int8/fp8)."""
    return max(8, 32 // max(jnp.dtype(dtype).itemsize, 1))


def _round_down(x: int, m: int) -> int:
    return max(m, (x // m) * m)


def _round_up(x: int, m: int) -> int:
    return ((x + m - 1) // m) * m


def _vmem_budgets():
    """(block budget bytes, scoped vmem_limit cap) from the chip generation."""
    try:
        cap = int(pltpu.get_tpu_info().vmem_capacity_bytes)
    except Exception:
        cap = 64 << 20                       # be conservative (v7x-sized)
    if cap >= (100 << 20):                   # v5e / v6e: 128 MiB VMEM per TC
        return 16 << 20, 64 << 20
    return 8 << 20, 32 << 20                 # v7x: 64 MiB / TC, 32 MiB scoped


def _vmem_limit(need_bytes: int, cap: int) -> int:
    return int(min(max(2 * need_bytes + (1 << 20), 4 << 20), cap))


def _pick_tile(extent: int, per_unit: int, budget: int, mult: int,
               want_two_tiles: bool, override) -> int:
    """Largest tile (multiple of `mult`, or full extent) fitting the budget."""
    if override is not None:
        return min(extent, max(mult, _round_up(int(override), mult)))
    t = budget // max(per_unit, 1)
    if t >= extent:
        t = extent
        if want_two_tiles and extent >= 2 * mult:
            # ensure >= 2 tiles so both TensorCores (v7x) get work
            t = _round_up(-(-extent // 2), mult)
    else:
        t = _round_down(t, mult)
    return max(1, min(t, extent))


# --------------------------------------------------------------------------
# kernels
# --------------------------------------------------------------------------
def _mean_flat_kernel(x_ref, o_ref, *, inv_nc: float):
    """Lane-dense mean (normalize=False). x:(nc, tile_cols) -> o:(1, tile_cols)."""
    s = jnp.sum(x_ref[...].astype(jnp.float32), axis=0, keepdims=True)
    o_ref[...] = (s * inv_nc).astype(o_ref.dtype)


def _mean_norm_rows_kernel(x_ref, o_ref, *, eps_nc: float):
    """Mean + L2 normalize (dim=1). x:(nc, tile_rows, D) -> o:(tile_rows, D).

    mean/max(||mean||, eps) == sum * rsqrt(max(||sum||^2, (eps*nc)^2)),
    so the 1/nc multiply is folded away and the epilogue is one EUP rsqrt
    plus one VPU multiply.
    """
    s = jnp.sum(x_ref[...].astype(jnp.float32), axis=0)
    sumsq = jnp.sum(s * s, axis=-1, keepdims=True)
    o_ref[...] = (s * jax.lax.rsqrt(jnp.maximum(sumsq, eps_nc * eps_nc))
                  ).astype(o_ref.dtype)


def _chunk_grid_fallback_kernel(x_ref, o_ref, acc_ref, *, inv_nc: float,
                                eps_nc: float, normalize: bool):
    """Fallback: chunk axis as an 'arbitrary' grid reduction with f32 scratch."""
    c = pl.program_id(1)

    @pl.when(c == 0)
    def _():
        acc_ref[...] = jnp.zeros_like(acc_ref)

    acc_ref[...] += x_ref[...].astype(jnp.float32)

    @pl.when(c == pl.num_programs(1) - 1)
    def _():
        s = acc_ref[...]
        if normalize:
            sumsq = jnp.sum(s * s, axis=-1, keepdims=True)
            out = s * jax.lax.rsqrt(jnp.maximum(sumsq, eps_nc * eps_nc))
        else:
            out = s * inv_nc
        o_ref[...] = out.astype(o_ref.dtype)


# --------------------------------------------------------------------------
# reference + wrapper
# --------------------------------------------------------------------------
def chunk_avg_ref(x, num_chunks: int = 4, normalize: bool = False,
                  eps: float = 1e-12):
    """Pure-JAX reference mirroring the PyTorch module."""
    B, D = x.shape
    n = B // num_chunks
    m = x.reshape(num_chunks, n, D).astype(jnp.float32).mean(0)
    if normalize:
        norm = jnp.sqrt(jnp.sum(m * m, axis=1, keepdims=True))
        m = m / jnp.maximum(norm, eps)
    return m.astype(x.dtype)


def chunk_avg(x, num_chunks: int = 4, normalize: bool = False,
              eps: float = 1e-12, *, tile_override: int | None = None,
              force_pallas: bool = False, _force_chunk_grid: bool = False):
    """Pallas implementation of Chunk_Avg.forward.

    x: (B, D) with B divisible by num_chunks. Returns (B // num_chunks, D).
    """
    B, D = x.shape
    assert B % num_chunks == 0, "batch dim must be divisible by num_chunks"
    n = B // num_chunks
    nc = num_chunks

    out_dtype = x.dtype
    in_isz = jnp.dtype(x.dtype).itemsize
    out_isz = jnp.dtype(out_dtype).itemsize
    total_in_bytes = B * D * in_isz

    # Small-shape fast path: the kernel would be pure launch/step overhead.
    if (not force_pallas and not _force_chunk_grid
            and total_in_bytes < _SMALL_FAST_PATH_BYTES):
        return chunk_avg_ref(x, num_chunks, normalize, eps)

    budget, limit_cap = _vmem_budgets()
    sub = _sublane(x.dtype)
    inv_nc = 1.0 / float(nc)
    eps_nc = float(eps) * float(nc)
    want_two_tiles = total_in_bytes >= _TWO_TILE_MIN_BYTES

    cost = pl.CostEstimate(
        flops=int(B * D + 3 * n * D),
        transcendentals=int(n if normalize else 0),
        bytes_accessed=int(B * D * in_isz + n * D * out_isz),
    )

    # Fallback only needed when a single folded block at the minimum row tile
    # would not fit the budget (normalize path needs full D per block).
    folded_min_block = sub * D * (2 * nc * in_isz + 2 * out_isz + 4)
    use_fallback = _force_chunk_grid or (normalize and folded_min_block > budget)

    if not use_fallback and not normalize:
        # ---- lane-dense flat path: mean is elementwise, so flatten (n, D). --
        flat = n * D
        per_col = 2 * nc * in_isz + 2 * out_isz + 4
        tc_ = _pick_tile(flat, per_col, budget, _LANE, want_two_tiles,
                         tile_override)
        n_tiles = pl.cdiv(flat, tc_)
        vmem_need = tc_ * (2 * nc * in_isz + 2 * out_isz)

        xr = x.reshape(nc, flat)
        out2d = pl.pallas_call(
            functools.partial(_mean_flat_kernel, inv_nc=inv_nc),
            out_shape=jax.ShapeDtypeStruct((1, flat), out_dtype),
            grid_spec=pltpu.PrefetchScalarGridSpec(
                num_scalar_prefetch=0,
                grid=(n_tiles,),
                in_specs=[pl.BlockSpec((nc, tc_), lambda i: (0, i))],
                out_specs=pl.BlockSpec((1, tc_), lambda i: (0, i)),
            ),
            compiler_params=pltpu.CompilerParams(
                dimension_semantics=("parallel",),
                vmem_limit_bytes=_vmem_limit(vmem_need, limit_cap),
            ),
            cost_estimate=cost,
        )(xr)
        return out2d.reshape(n, D)

    xr3 = x.reshape(nc, n, D)

    if not use_fallback:
        # ---- folded-chunk row path (normalize=True): D on the lane axis. ----
        per_row = D * (2 * nc * in_isz + 2 * out_isz + 4)
        tr = _pick_tile(n, per_row, budget, sub, want_two_tiles, tile_override)
        n_tiles = pl.cdiv(n, tr)
        vmem_need = tr * D * (2 * nc * in_isz + 2 * out_isz)

        return pl.pallas_call(
            functools.partial(_mean_norm_rows_kernel, eps_nc=eps_nc),
            out_shape=jax.ShapeDtypeStruct((n, D), out_dtype),
            grid_spec=pltpu.PrefetchScalarGridSpec(
                num_scalar_prefetch=0,
                grid=(n_tiles,),
                in_specs=[pl.BlockSpec((nc, tr, D), lambda i: (0, i, 0))],
                out_specs=pl.BlockSpec((tr, D), lambda i: (i, 0)),
            ),
            compiler_params=pltpu.CompilerParams(
                dimension_semantics=("parallel",),
                vmem_limit_bytes=_vmem_limit(vmem_need, limit_cap),
            ),
            cost_estimate=cost,
        )(xr3)

    # ---- fallback: chunk axis as innermost ("arbitrary") grid reduction. ----
    per_row = D * (2 * in_isz + 2 * out_isz + 4)
    tr = _pick_tile(n, per_row, budget, sub, want_two_tiles, tile_override)
    n_tiles = pl.cdiv(n, tr)
    vmem_need = tr * D * (2 * in_isz + 2 * out_isz + 4)

    return pl.pallas_call(
        functools.partial(_chunk_grid_fallback_kernel, inv_nc=inv_nc,
                          eps_nc=eps_nc, normalize=normalize),
        out_shape=jax.ShapeDtypeStruct((n, D), out_dtype),
        grid_spec=pltpu.PrefetchScalarGridSpec(
            num_scalar_prefetch=0,
            grid=(n_tiles, nc),
            in_specs=[pl.BlockSpec((pl.Squeezed(), tr, D),
                                   lambda i, c: (c, i, 0))],
            out_specs=pl.BlockSpec((tr, D), lambda i, c: (i, 0)),
            scratch_shapes=[pltpu.VMEM((tr, D), jnp.float32)],
        ),
        compiler_params=pltpu.CompilerParams(
            dimension_semantics=("parallel", "arbitrary"),
            vmem_limit_bytes=_vmem_limit(vmem_need, limit_cap),
        ),
        cost_estimate=cost,
    )(xr3)


# --------------------------------------------------------------------------
# self-test
# --------------------------------------------------------------------------
if __name__ == "__main__":
    key = jax.random.PRNGKey(0)

    # module-default-ish small shapes: num_chunks=4, n=8, hidden=32 -> B=32
    num_chunks = 4
    n_per_chunk = 8
    hidden = 32
    B = num_chunks * n_per_chunk
    x = jax.random.normal(key, (B, hidden), dtype=jnp.float32)

    # 1) Pallas lane-dense flat path (normalize=False)
    out = jax.block_until_ready(
        chunk_avg(x, num_chunks, normalize=False, force_pallas=True))
    ref = chunk_avg_ref(x, num_chunks, normalize=False)
    assert out.shape == (n_per_chunk, hidden)
    assert jnp.allclose(out, ref, atol=1e-5, rtol=1e-5)

    # 2) Pallas row path (normalize=True)
    out_n = jax.block_until_ready(
        chunk_avg(x, num_chunks, normalize=True, force_pallas=True))
    ref_n = chunk_avg_ref(x, num_chunks, normalize=True)
    assert jnp.allclose(out_n, ref_n, atol=1e-5, rtol=1e-5)

    # 3) small-shape fast path (pure JAX)
    out_fast = jax.block_until_ready(chunk_avg(x, num_chunks, normalize=True))
    assert jnp.allclose(out_fast, ref_n, atol=1e-5, rtol=1e-5)

    # 4) multi-tile row path (normalize=True)
    key2 = jax.random.PRNGKey(1)
    n2, d2 = 32, 128
    x2 = jax.random.normal(key2, (num_chunks * n2, d2), dtype=jnp.float32)
    ref2n = chunk_avg_ref(x2, num_chunks, normalize=True)
    out2n = jax.block_until_ready(
        chunk_avg(x2, num_chunks, normalize=True, force_pallas=True,
                  tile_override=8))
    assert jnp.allclose(out2n, ref2n, atol=1e-5, rtol=1e-5)

    # 5) multi-tile flat path (normalize=False)
    ref2 = chunk_avg_ref(x2, num_chunks, normalize=False)
    out2 = jax.block_until_ready(
        chunk_avg(x2, num_chunks, normalize=False, force_pallas=True,
                  tile_override=1024))
    assert jnp.allclose(out2, ref2, atol=1e-5, rtol=1e-5)

    # 6) bf16 input (flat path, f32 accumulation inside the kernel)
    x3 = x2.astype(jnp.bfloat16)
    out3 = jax.block_until_ready(
        chunk_avg(x3, num_chunks, normalize=False, force_pallas=True))
    ref3 = chunk_avg_ref(x3, num_chunks, normalize=False)
    assert jnp.allclose(out3.astype(jnp.float32), ref3.astype(jnp.float32),
                        atol=2e-2, rtol=2e-2)

    # 7) chunk-axis-as-grid fallback path
    out4 = jax.block_until_ready(
        chunk_avg(x2, num_chunks, normalize=True, force_pallas=True,
                  _force_chunk_grid=True, tile_override=16))
    assert jnp.allclose(out4, ref2n, atol=1e-5, rtol=1e-5)

    print("KERNEL_OK")
</pallas_src>

<mosaic_0001>
module attributes {stable_mosaic.version = 11 : i64} {
  func.func @_mean_flat_kernel(%arg0: i32, %arg1: memref<4x256xf32, #tpu.memory_space<vmem>>, %arg2: memref<1x256xf32, #tpu.memory_space<vmem>>) attributes {dimension_semantics = [#tpu.dimension_semantics<parallel>], iteration_bounds = array<i64: 1>, scalar_prefetch = 0 : i64, scratch_operands = 0 : i64, tpu.core_type = #tpu.core_type<tc>, window_params = [{transform_indices = @transform_0, window_bounds = array<i64: 4, 256>}, {transform_indices = @transform_1, window_bounds = array<i64: 1, 256>}]} {
    %c0 = arith.constant 0 : index
    %c0_0 = arith.constant 0 : index
    %0 = vector.load %arg1[%c0, %c0_0] : memref<4x256xf32, #tpu.memory_space<vmem>>, vector<4x256xf32>
    %cst = arith.constant dense<0.000000e+00> : vector<256xf32>
    %1 = vector.multi_reduction <add>, %0, %cst [0] : vector<4x256xf32> to vector<256xf32>
    %2 = vector.shape_cast %1 : vector<256xf32> to vector<1x256xf32>
    %cst_1 = arith.constant 2.500000e-01 : f32
    %3 = vector.broadcast %cst_1 : f32 to vector<1x256xf32>
    %4 = arith.mulf %2, %3 : vector<1x256xf32>
    %c0_2 = arith.constant 0 : index
    %c0_3 = arith.constant 0 : index
    %5 = vector.load %arg2[%c0_2, %c0_3] : memref<1x256xf32, #tpu.memory_space<vmem>>, vector<1x256xf32>
    tpu.vector_store %arg2[%c0_2, %c0_3], %4 {strides = array<i32>} : memref<1x256xf32, #tpu.memory_space<vmem>>, vector<1x256xf32>,
    return
  }
  func.func @transform_0(%arg0: i32) -> (i32, i32) {
    %c0_i32 = arith.constant 0 : i32
    %c0_i32_0 = arith.constant 0 : i32
    return %c0_i32, %arg0 : i32, i32
  }
  func.func @transform_1(%arg0: i32) -> (i32, i32) {
    %c0_i32 = arith.constant 0 : i32
    %c0_i32_0 = arith.constant 0 : i32
    return %c0_i32, %arg0 : i32, i32
  }
}

</mosaic_0001>

<bundles_post_ra>
// kernel: tpu_custom_call.1
= control target key start
LH: loop header
LB: loop body
LE: loop exit
PB: predicated region body
PF: predicated region fallthrough
CT: control target
= control target key end

     0   :  { %6 = vsyncpa [#allocation3], 0  ;;  %s169_s0 = inlined_call_operand.hbm [shape: f32[4,256], index: 0, kind: input, shape index: {}]   ;;  %s170_s1 = inlined_call_operand.hbm [shape: f32[1,256], index: 1, kind: output, shape index: {}]  }
   0x1   :  { %7 = vsyncpa [#allocation4], 0  ;;  %s132_s6 = smov [#allocation2]   ;;  %s84_s10 = scalar_lea.hbm %s169_s0, 128 }
   0x2   :  { %s14_s7 = sshll.u32 %s132_s6, 4  ;;  %p85_p0 = scmp.ne.s32.totalorder %s169_s0, %s84_s10  ;;  %s15_s7 = int_to_ptr.vmem [resolvable:$true] %s14_s7 }
   0x3   :  { %p88_p1 = scmp.lt.u32.totalorder %s84_s10, %s169_s0 }
   0x5   :  { %p90_p2 = pnand %p88_p1, %p85_p0 }
   0x7   :  { %93 = shalt.err (!%p90_p2)
}
   0x8   :  { %s94_s15 = scalar_lea.vmem %s15_s7, 128  ;;  %p99_p4 = scmp.lt.s32.totalorder %s15_s7, %s15_s7 }
   0x9   :  { %p95_p3 = scmp.ne.s32.totalorder %s15_s7, %s94_s15  ;;  %p100_p5 = scmp.lt.s32.totalorder %s94_s15, %s94_s15 }
   0xb   :  { %p101_p6 = por %p100_p5, %p99_p4 }
   0xd   :  { %p102_p7 = pnand %p101_p6, %p95_p3 }
   0xf   :  { %105 = shalt.err (!%p102_p7)
}
  0x10   :  { %17 = dma.hbm_to_vmem [thread:$0]  %s169_s0, 128, %s15_s7, [#allocation3]  }
  0x11   :  { %128 = dma.done.wait [#allocation3], 128  }
  0x12   :  { %129 = vsyncadd [#allocation3], 4294967168  ;;  %vm25_vm0 = vcmask 1043456   ;;  %v21_v0 = vld [vmem:[#allocation2] sm:$0xff]  ;;  %v133_v11 = vmov 1966171168   ;;  %v48_v13 = vlaneseq }
  0x13   :  { %v23_v1 = vcombine.high %v21_v0, %v21_v0  ;;  %v26_v2 = vsel %vm25_vm0, %v21_v0, 0.0  ;;  %v46_v12 = vunpack.c.l.s4 %v133_v11  ;;  %s134_s0 = smov [#allocation5]  }
  0x14   :  { %v27_v3 = vrot.slane %v26_v2, 4  ;;  %v49_v19 = vshrl.u32 %v48_v13, 7  ;;  %s71_s18 = sshll.u32 %s134_s0, 4  ;;  %vm62_vm1 = vcmp.lt.s32.totalorder %v48_v13, 256  ;;  %s72_s18 = int_to_ptr.vmem [resolvable:$true] %s71_s18 }
  0x15   :  { %v33_v4 = vsel %vm25_vm0, %v23_v1, 0.0  ;;  %v47_v18 = vunpack.c.0.s8 %v46_v12  ;;  %s106_s19 = scalar_lea.vmem %s72_s18, 32  ;;  %p111_p9 = scmp.lt.s32.totalorder %s72_s18, %s72_s18 }
  0x16   :  { %v28_v5 = vadd.f32 %v27_v3, %v26_v2  ;;  %v34_v6 = vrot.slane %v33_v4, 4  ;;  %p107_p8 = scmp.ne.s32.totalorder %s72_s18, %s106_s19  ;;  %p112_p10 = scmp.lt.s32.totalorder %s106_s19, %s106_s19 }
  0x17   :  { %v50_v23 = vsub.s32 %v47_v18, %v49_v19 }
  0x18   :  { %v29_v7 = vrot.slane %v28_v5, 2  ;;  %v35_v8 = vadd.f32 %v34_v6, %v33_v4  ;;  %p113_p11 = por %p112_p10, %p111_p9 }
  0x1a   :  { %v30_v9 = vadd.f32 %v29_v7, %v28_v5  ;;  %v36_v10 = vrot.slane %v35_v8, 2  ;;  %p114_p12 = pnand %p113_p11, %p107_p8 }
  0x1c   :  { %v31_v14 = vrot.slane %v30_v9, 1  ;;  %v37_v15 = vadd.f32 %v36_v10, %v35_v8 }
  0x1e   :  { %v32_v16 = vadd.f32 %v31_v14, %v30_v9  ;;  %v38_v17 = vrot.slane %v37_v15, 1 }
  0x20   :  { %v39_v20 = vadd.f32 %v38_v17, %v37_v15  ;;  %v40_v21 = vmul.f32 0.25, %v32_v16 }
  0x22   :  { %v41_v22 = vmul.f32 0.25, %v39_v20 }
  0x24   :  { %v44_v24 = vcombine.low %v40_v21, %v41_v22 }
  0x26   :  { %v51_v25 = vrot.slane %v44_v24, %v50_v23 }
  0x28   :  { %v58_v26 = vrot.slane %v51_v25, %v50_v23 }
  0x2a   :  { %64 = vst.msk [vmem:[#allocation5] sm:$0x3] %vm62_vm1, %v58_v26 }
  0x2b   :  { %117 = shalt.err (!%p114_p12)
}
  0x2c   :  { %s118_s22 = scalar_lea.hbm %s170_s1, 32 }
  0x2d   :  { %p119_p13 = scmp.ne.s32.totalorder %s170_s1, %s118_s22  ;;  %p122_p0 = scmp.lt.u32.totalorder %s118_s22, %s170_s1 }
  0x2f   :  { %p124_p1 = pnand %p122_p0, %p119_p13 }
  0x31   :  { %127 = shalt.err (!%p124_p1)
}
  0x32   :  { %74 = dma.vmem_to_hbm [thread:$0]  %s72_s18, 32, %s170_s1, [#allocation4]  }
  0x33   :  { %130 = dma.done.wait [#allocation4], 32  }
  0x34   :  { %131 = vsyncadd [#allocation4], 4294967264 }
  0x35   :  { %78 = vsyncpa [#allocation3], 1 }
  0x36   :  { %79 = vsyncpa [#allocation4], 1 }

</bundles_post_ra>
